<compile_context>
chip_gen: v7x
topology: tpu7x:2x2x1
jax: 0.10.0
libtpu: 0.0.40
codegen_flags: <defaults>
</compile_context>

<pallas_src>
import functools

import jax
import jax.numpy as jnp
from jax.experimental import pallas as pl
from jax.experimental.pallas import tpu as pltpu


def _round_up(x: int, m: int) -> int:
    return ((x + m - 1) // m) * m


def _round_down(x: int, m: int) -> int:
    return (x // m) * m


def linear_kernel(x_ref, w_ref, b_ref, o_ref, *, compute_dtype):
    # x_ref: (TB, F) tile in its native dtype (f32), w_ref: (F, C_pad) in
    # compute_dtype, b_ref: (1, C_pad) f32, o_ref: (TB, C_pad) out dtype.
    # Cast-on-VPU hides under the x DMA; single MXU matmul with f32 accumulation.
    x = x_ref[...].astype(compute_dtype)
    y = jnp.dot(x, w_ref[...], preferred_element_type=jnp.float32)
    o_ref[...] = (y + b_ref[...]).astype(o_ref.dtype)


@functools.partial(jax.jit, static_argnames=("block_b",))
def audio_classifier_forward(x, weight, bias, *, block_b: int = 1024):
    """Forward pass of AudioClassifier: x @ weight.T + bias.

    x:      (batch, feature_dim) float32
    weight: (num_classes, feature_dim) float32   (PyTorch nn.Linear layout)
    bias:   (num_classes,) float32
    returns (batch, num_classes) float32
    """
    B, F = x.shape
    C = weight.shape[0]

    # Lane-dense output: pad classes to exactly one 128-lane vreg width.
    C_pad = _round_up(max(C, 1), 128)

    # bf16 operands (MXU-native) for realistic wav2vec2 hidden sizes (>=512),
    # with f32 accumulation in the kernel; tiny demo shapes stay f32 (exact).
    use_bf16 = F >= 512
    compute_dtype = jnp.bfloat16 if use_bf16 else x.dtype
    out_dtype = jnp.bfloat16 if use_bf16 else jnp.float32

    x_bytes = jnp.dtype(x.dtype).itemsize
    w_bytes = jnp.dtype(compute_dtype).itemsize
    o_bytes = jnp.dtype(out_dtype).itemsize

    # Batch tile: multiple of 8 sublanes, capped so double-buffered x + out
    # tiles plus the (double-buffered) resident weight/bias stay under ~12 MiB.
    tb = max(8, _round_down(block_b, 8))
    tb = min(tb, _round_up(B, 8))
    vmem_budget = 12 * 1024 * 1024
    fixed = 2 * (F * C_pad * w_bytes + 8 * C_pad * 4)          # weight + bias bufs
    per_row = 2 * (F * x_bytes + C_pad * o_bytes)              # x + out, double-buffered
    max_tb = max(8, _round_down((vmem_budget - fixed) // per_row, 8))
    tb = min(tb, max_tb)

    n_steps = pl.cdiv(B, tb)

    # Weight/bias layout prep (tiny, one-off; weight transposed + lane padded).
    w_p = jnp.zeros((F, C_pad), compute_dtype).at[:, :C].set(
        weight.T.astype(compute_dtype))
    b_p = jnp.zeros((1, C_pad), jnp.float32).at[0, :C].set(
        bias.astype(jnp.float32))

    cost = pl.CostEstimate(
        flops=2 * n_steps * tb * F * C_pad,
        transcendentals=0,
        bytes_accessed=(B * F * x_bytes          # x streamed once, native dtype
                        + F * C_pad * w_bytes    # resident weight
                        + C_pad * 4              # bias
                        + B * C_pad * o_bytes),  # output writeback
    )

    kernel = functools.partial(linear_kernel, compute_dtype=compute_dtype)

    # NOTE: when B % tb != 0 the boundary block computes garbage for the
    # out-of-range rows; only the [:, :C] (and row :B) slice below is valid —
    # never consume out_padded directly.
    out_padded = pl.pallas_call(
        kernel,
        out_shape=jax.ShapeDtypeStruct((B, C_pad), out_dtype),
        grid=(n_steps,),
        in_specs=[
            pl.BlockSpec((tb, F), lambda i: (i, 0)),        # x: batch-tiled, pipelined
            pl.BlockSpec((F, C_pad), lambda i: (0, 0)),     # weight: resident
            pl.BlockSpec((1, C_pad), lambda i: (0, 0)),     # bias: resident
        ],
        out_specs=pl.BlockSpec((tb, C_pad), lambda i: (i, 0)),
        compiler_params=pltpu.CompilerParams(
            dimension_semantics=("parallel",),              # 2 TCs on v7x
        ),
        cost_estimate=cost,
    )(x, w_p, b_p)

    # Slice away the class-lane padding and return in the caller's dtype.
    return out_padded[:, :C].astype(x.dtype)


if __name__ == "__main__":
    key = jax.random.PRNGKey(0)
    kx, kw, kb, kx2, kw2, kb2 = jax.random.split(key, 6)

    # --- Exact f32 path: small shapes consistent with the module ------------
    batch, feature_dim, num_classes = 8, 32, 2
    bound = 1.0 / jnp.sqrt(jnp.float32(feature_dim))
    x = jax.random.normal(kx, (batch, feature_dim), dtype=jnp.float32)
    weight = jax.random.uniform(
        kw, (num_classes, feature_dim), minval=-bound, maxval=bound,
        dtype=jnp.float32)
    bias = jax.random.uniform(
        kb, (num_classes,), minval=-bound, maxval=bound, dtype=jnp.float32)

    out = jax.block_until_ready(audio_classifier_forward(x, weight, bias))
    ref = x @ weight.T + bias
    assert out.shape == (batch, num_classes)
    assert out.dtype == x.dtype
    assert jnp.allclose(out, ref, atol=1e-5, rtol=1e-5)

    # --- bf16 path: wav2vec2-base hidden size (quantifies bf16 operand error)
    feature_dim2 = 768
    bound2 = 1.0 / jnp.sqrt(jnp.float32(feature_dim2))
    x2 = jax.random.normal(kx2, (batch, feature_dim2), dtype=jnp.float32)
    weight2 = jax.random.uniform(
        kw2, (num_classes, feature_dim2), minval=-bound2, maxval=bound2,
        dtype=jnp.float32)
    bias2 = jax.random.uniform(
        kb2, (num_classes,), minval=-bound2, maxval=bound2, dtype=jnp.float32)

    out2 = jax.block_until_ready(audio_classifier_forward(x2, weight2, bias2))
    ref2 = x2 @ weight2.T + bias2
    assert out2.shape == (batch, num_classes)
    assert jnp.allclose(out2, ref2, atol=3e-2, rtol=3e-2)

    print("KERNEL_OK")
</pallas_src>

<mosaic_0001>
module attributes {stable_mosaic.version = 11 : i64} {
  func.func @linear_kernel(%arg0: i32, %arg1: memref<8x32xf32, #tpu.memory_space<vmem>>, %arg2: memref<32x128xf32, #tpu.memory_space<vmem>>, %arg3: memref<1x128xf32, #tpu.memory_space<vmem>>, %arg4: memref<8x128xf32, #tpu.memory_space<vmem>>) attributes {dimension_semantics = [#tpu.dimension_semantics<parallel>], iteration_bounds = array<i64: 1>, scalar_prefetch = 0 : i64, scratch_operands = 0 : i64, tpu.core_type = #tpu.core_type<tc>, window_params = [{transform_indices = @transform_0, window_bounds = array<i64: 8, 32>}, {pipeline_mode = #tpu.pipeline_mode<synchronous>, transform_indices = @transform_1, window_bounds = array<i64: 32, 128>}, {pipeline_mode = #tpu.pipeline_mode<synchronous>, transform_indices = @transform_2, window_bounds = array<i64: 1, 128>}, {transform_indices = @transform_3, window_bounds = array<i64: 8, 128>}]} {
    %c0 = arith.constant 0 : index
    %c0_0 = arith.constant 0 : index
    %0 = vector.load %arg1[%c0, %c0_0] : memref<8x32xf32, #tpu.memory_space<vmem>>, vector<8x32xf32>
    %c0_1 = arith.constant 0 : index
    %c0_2 = arith.constant 0 : index
    %1 = vector.load %arg2[%c0_1, %c0_2] : memref<32x128xf32, #tpu.memory_space<vmem>>, vector<32x128xf32>
    %cst = arith.constant dense<0.000000e+00> : vector<8x128xf32>
    %2 = tpu.matmul %0, %1, %cst {dimension_numbers = #tpu.dot_dimension_numbers<[1], [0], [0], [1], [0, 0, 1, 1], [], []>} : vector<8x32xf32>, vector<32x128xf32>, vector<8x128xf32> -> vector<8x128xf32>
    %c0_3 = arith.constant 0 : index
    %c0_4 = arith.constant 0 : index
    %3 = vector.load %arg3[%c0_3, %c0_4] : memref<1x128xf32, #tpu.memory_space<vmem>>, vector<1x128xf32>
    %4 = vector.broadcast %3 : vector<1x128xf32> to vector<8x128xf32>
    %5 = arith.addf %2, %4 : vector<8x128xf32>
    %c0_5 = arith.constant 0 : index
    %c0_6 = arith.constant 0 : index
    %6 = vector.load %arg4[%c0_5, %c0_6] : memref<8x128xf32, #tpu.memory_space<vmem>>, vector<8x128xf32>
    tpu.vector_store %arg4[%c0_5, %c0_6], %5 {strides = array<i32>} : memref<8x128xf32, #tpu.memory_space<vmem>>, vector<8x128xf32>,
    return
  }
  func.func @transform_0(%arg0: i32) -> (i32, i32) {
    %c0_i32 = arith.constant 0 : i32
    %c0_i32_0 = arith.constant 0 : i32
    return %arg0, %c0_i32 : i32, i32
  }
  func.func @transform_1(%arg0: i32) -> (i32, i32) {
    %c0_i32 = arith.constant 0 : i32
    %c0_i32_0 = arith.constant 0 : i32
    %c0_i32_1 = arith.constant 0 : i32
    return %c0_i32, %c0_i32_0 : i32, i32
  }
  func.func @transform_2(%arg0: i32) -> (i32, i32) {
    %c0_i32 = arith.constant 0 : i32
    %c0_i32_0 = arith.constant 0 : i32
    %c0_i32_1 = arith.constant 0 : i32
    return %c0_i32, %c0_i32_0 : i32, i32
  }
  func.func @transform_3(%arg0: i32) -> (i32, i32) {
    %c0_i32 = arith.constant 0 : i32
    %c0_i32_0 = arith.constant 0 : i32
    return %arg0, %c0_i32 : i32, i32
  }
}

</mosaic_0001>

<bundles_post_ra>
// kernel: audio_classifier_forward.1
= control target key start
LH: loop header
LB: loop body
LE: loop exit
PB: predicated region body
PF: predicated region fallthrough
CT: control target
= control target key end

     0   :  { %v132_v0 = vmov 0.0|0.0   ;;  %vm133_vm0 = vmmov 0   ;;  %v134_v4 = vmov 0.0   ;;  %vm26_vm1 = vcmask 261120   ;;  %s176_s1 = inlined_call_operand.vmem [shape: f32[32,128], index: 1, kind: input, shape index: {}]   ;;  %s177_s0 = inlined_call_operand.vmem [shape: f32[8,32], index: 0, kind: input, shape index: {}]   ;;  %s178_s2 = inlined_call_operand.vmem [shape: f32[1,128], index: 2, kind: input, shape index: {}]   ;;  %s179_s3 = inlined_call_operand.vmem [shape: f32[8,128], index: 3, kind: output, shape index: {}]  }
   0x1   :  { %123 = vmatprep.subr.bf16.mxu0 %v132_v0  ;;  %v15_v1 = vld [vmem:[%s176_s1] sm:$0xff]  ;;  %v16_v2 = vld [vmem:[%s176_s1 + $0x8] sm:$0xff]  ;;  %v17_v3 = vld [vmem:[%s176_s1 + $0x10] sm:$0xff]  ;;  %120 = vmatprep.mubr.msk.f32.mxu0 %vm133_vm0, %v134_v4 }
   0x2   :  { %v124_v5 = vpack.c.bf16 %v16_v2, %v15_v1  ;;  %v18_v6 = vld [vmem:[%s176_s1 + $0x18] sm:$0xff]  ;;  %v14_v8 = vld [vmem:[%s177_s0] sm:$0xff] }
   0x3   :  { %v127_v7 = vpack.c.bf16 %v18_v6, %v17_v3  ;;  %v105_v9 = vld [vmem:[%s178_s2] ss:$0 sm:$0xff] }
   0x4   :  { %125 = vmatpush3.bf16.msra.mxu0 %v124_v5 }
   0x5   :  { %126 = vmatprep.subr.bf16.mxu0 %v132_v0 }
   0x8   :  { %128 = vmatpush3.bf16.msra.mxu0 %v127_v7 }
   0xb   :  { %121 = vmatmul.mubr.msk.f32.vlgmr.msra.gmra.mrb[0].mxu0 %vm26_vm1, %v14_v8 }
  0xde   :  { %v96_v10 = vpop.f32.mrb[0].mxu0 }
  0xdf   :  { %v97_v11 = vadd.f32 %v105_v9, %v96_v10  ;;  %v122_v12 = vpop.f32.mrb[1].mxu0 }
  0xe1   :  { %100 = vst [vmem:[%s179_s3] sm:$0xff] %v97_v11 }

</bundles_post_ra>
